<compile_context>
chip_gen: v5e
topology: v5e:2x2
jax: 0.10.0
libtpu: 0.0.40
codegen_flags: <defaults>
</compile_context>

<pallas_src>
import jax
import jax.numpy as jnp
from jax import lax
from jax.experimental import pallas as pl
from jax.experimental.pallas import tpu as pltpu

EPS = 1e-5


def _round_up(a, b):
    return (a + b - 1) // b * b


def gen_block_kernel(w_ref, ph_ref, o_ref):
    # w_ref : (16, Cout_p, Cin)      bf16   tap index t = kh*4 + kw
    # ph_ref: (1, 4, OHp, Cin, OWp)  bf16   phase index p = (kh%2)*2 + (kw%2)
    # o_ref : (1, OH, Cout_p, OW)    f32    row-major by output row (VMEM-resident)
    OH, Cout_p, OW = o_ref.shape[1], o_ref.shape[2], o_ref.shape[3]
    inv_p = jnp.float32(1.0 / (OH * OW))

    # ---- pass 1: conv rows (16 tap matmuls on the MXU, f32 accumulate) + row sums
    def conv_row(r, sum_c):
        acc = jnp.zeros((Cout_p, OW), jnp.float32)
        for kh in range(4):
            for kw in range(4):
                ph = (kh % 2) * 2 + (kw % 2)
                roff, coff = kh // 2, kw // 2
                # unit-stride (Cin, OW) window of the phase block; dynamic index
                # only on a leading (untiled) dim, static lane slice.
                xs = ph_ref[0, ph, r + roff, :, coff:coff + OW]
                acc = acc + jnp.dot(w_ref[kh * 4 + kw], xs,
                                    preferred_element_type=jnp.float32)
        o_ref[0, r, :, :] = acc                       # full-tile store
        return sum_c + jnp.sum(acc, axis=-1, keepdims=True)

    sums = lax.fori_loop(0, OH, conv_row, jnp.zeros((Cout_p, 1), jnp.float32))
    mean = sums * inv_p                               # (Cout_p, 1)

    # ---- pass 2: exact (mean-shifted) variance over the resident conv result
    def var_row(r, v):
        c = o_ref[0, r, :, :] - mean
        return v + jnp.sum(c * c, axis=-1, keepdims=True)

    varsum = lax.fori_loop(0, OH, var_row, jnp.zeros((Cout_p, 1), jnp.float32))
    inv_std = lax.rsqrt(varsum * inv_p + EPS)         # rsqrt -> EUP slot

    # ---- pass 3: normalize + ReLU in place
    def norm_row(r, carry):
        o_ref[0, r, :, :] = jnp.maximum((o_ref[0, r, :, :] - mean) * inv_std, 0.0)
        return carry

    lax.fori_loop(0, OH, norm_row, 0)


def gen_block_forward(x, w, b=None):
    """genBlock(mode='Down', relu, no dropout) forward.

    x: (N, Cin, H, W) float; w: (Cout, Cin, 4, 4); b: (Cout,) unused — exactly
    cancelled by InstanceNorm2d(affine=False).  Returns (N, Cout, H//2, W//2) f32.
    """
    del b  # valid ONLY because the norm is InstanceNorm2d(affine=False)
    N, Cin, H, W = x.shape
    Cout = w.shape[0]
    assert H % 2 == 0 and W % 2 == 0, "stride-2 down block expects even H, W"
    OH, OW = H // 2, W // 2
    OHp, OWp = OH + 1, OW + 1
    Cout_p = _round_up(Cout, 8)   # sublane granule; real layers (64..512) already aligned

    # bf16 BEFORE pad / phase split (review item: halves wrapper HBM traffic).
    xb = x.astype(jnp.bfloat16)
    xp = jnp.pad(xb, ((0, 0), (0, 0), (1, 1), (1, 1)), mode="reflect")
    # Stride-2 phase split: phase (rp, cp) = xp[:, :, rp::2, cp::2].  Every conv
    # tap becomes a unit-stride window of one phase — exactly 1x padded-input
    # volume (no 4x im2col expansion, no extra HBM round trip).
    phases = jnp.stack([xp[:, :, rp::2, cp::2] for rp in (0, 1) for cp in (0, 1)],
                       axis=1)                              # (N, 4, Cin, OHp, OWp)
    phases = jnp.transpose(phases, (0, 1, 3, 2, 4))         # (N, 4, OHp, Cin, OWp)

    # Weight taps (16, Cout_p, Cin), t = kh*4 + kw; zero-pad Cout to the granule.
    wt = jnp.transpose(w, (2, 3, 0, 1)).reshape(16, Cout, Cin)
    if Cout_p != Cout:
        wt = jnp.pad(wt, ((0, 0), (0, Cout_p - Cout), (0, 0)))
    wt = wt.astype(jnp.bfloat16)

    # Explicit VMEM budget: double-buffered phase/out blocks + weights + headroom,
    # clamped to a range that is valid on v5e/v6e/v7x.
    phase_blk = 4 * OHp * _round_up(Cin, 16) * _round_up(OWp, 128) * 2
    out_blk = OH * _round_up(Cout_p, 8) * _round_up(OW, 128) * 4
    w_blk = 16 * _round_up(Cout_p, 16) * _round_up(Cin, 128) * 2
    vmem_limit = int(min(max(2 * (phase_blk + out_blk) + 2 * w_blk + (8 << 20),
                             32 << 20), 100 << 20))

    cost = pl.CostEstimate(
        flops=2 * N * Cout_p * (16 * Cin) * OH * OW,
        transcendentals=N * Cout_p,
        bytes_accessed=phases.size * 2 + wt.size * 2 + N * OH * Cout_p * OW * 4,
    )

    out = pl.pallas_call(
        gen_block_kernel,
        out_shape=jax.ShapeDtypeStruct((N, OH, Cout_p, OW), jnp.float32),
        grid_spec=pl.GridSpec(
            grid=(N,),  # one image per step; 'parallel' feeds both v7x TensorCores
            in_specs=[
                pl.BlockSpec((16, Cout_p, Cin), lambda n: (0, 0, 0)),
                pl.BlockSpec((1, 4, OHp, Cin, OWp), lambda n: (n, 0, 0, 0, 0)),
            ],
            out_specs=pl.BlockSpec((1, OH, Cout_p, OW), lambda n: (n, 0, 0, 0)),
        ),
        compiler_params=pltpu.CompilerParams(
            dimension_semantics=("parallel",),
            vmem_limit_bytes=vmem_limit,
        ),
        cost_estimate=cost,
    )(wt, phases)

    # (N, OH, Cout_p, OW) -> NCHW.  Done by XLA so in-kernel row stores stay
    # full-tile / lane-dense instead of per-channel masked strip stores.
    out = jnp.transpose(out, (0, 2, 1, 3))
    if Cout_p != Cout:
        out = out[:, :Cout]
    return out


def reference_forward(x, w, b):
    # Reference uses the same bf16-rounded operands the kernel feeds the MXU
    # (f32 accumulate) and KEEPS the conv bias to demonstrate that dropping it
    # inside the kernel is exact under InstanceNorm2d(affine=False).
    xb = x.astype(jnp.bfloat16).astype(jnp.float32)
    wb = w.astype(jnp.bfloat16).astype(jnp.float32)
    xp = jnp.pad(xb, ((0, 0), (0, 0), (1, 1), (1, 1)), mode="reflect")
    y = jax.lax.conv_general_dilated(
        xp, wb, window_strides=(2, 2), padding="VALID",
        dimension_numbers=("NCHW", "OIHW", "NCHW"))
    y = y + b[None, :, None, None]
    mean = y.mean(axis=(2, 3), keepdims=True)
    var = ((y - mean) ** 2).mean(axis=(2, 3), keepdims=True)
    y = (y - mean) * jax.lax.rsqrt(var + EPS)
    return jnp.maximum(y, 0.0)


if __name__ == "__main__":
    key = jax.random.PRNGKey(0)
    kx, kwgt, kb = jax.random.split(key, 3)

    N, Cin, Cout, H, W = 2, 4, 8, 16, 16
    x = jax.random.normal(kx, (N, Cin, H, W), dtype=jnp.float32)
    # Deterministic synthetic parameters (Conv2d weight (Cout, Cin, 4, 4), bias (Cout,))
    w = jax.random.normal(kwgt, (Cout, Cin, 4, 4), dtype=jnp.float32) * 0.1
    b = jax.random.normal(kb, (Cout,), dtype=jnp.float32) * 0.1

    out = jax.block_until_ready(gen_block_forward(x, w, b))
    ref = jax.block_until_ready(reference_forward(x, w, b))

    assert out.shape == (N, Cout, H // 2, W // 2), out.shape
    max_err = float(jnp.abs(out - ref).max())
    assert jnp.allclose(out, ref, atol=2e-3, rtol=2e-3), max_err

    print("KERNEL_OK")
</pallas_src>

<mosaic_0001>
module attributes {stable_mosaic.version = 11 : i64} {
  func.func @gen_block_kernel(%arg0: i32, %arg1: memref<16x8x4xbf16, #tpu.memory_space<vmem>>, %arg2: memref<1x4x9x4x9xbf16, #tpu.memory_space<vmem>>, %arg3: memref<1x8x8x8xf32, #tpu.memory_space<vmem>>) attributes {dimension_semantics = [#tpu.dimension_semantics<parallel>], iteration_bounds = array<i64: 2>, scalar_prefetch = 0 : i64, scratch_operands = 0 : i64, tpu.core_type = #tpu.core_type<tc>, window_params = [{pipeline_mode = #tpu.pipeline_mode<synchronous>, transform_indices = @transform_0, window_bounds = array<i64: 16, 8, 4>}, {transform_indices = @transform_1, window_bounds = array<i64: 1, 4, 9, 4, 9>}, {transform_indices = @transform_2, window_bounds = array<i64: 1, 8, 8, 8>}]} {
    %cst = arith.constant 0.000000e+00 : f32
    %0 = vector.broadcast %cst : f32 to vector<8x1xf32>
    %c0_i32 = arith.constant 0 : i32
    %c8_i32 = arith.constant 8 : i32
    %1 = arith.addi %c0_i32, %c8_i32 : i32
    %c1_i32 = arith.constant 1 : i32
    %2 = scf.for %arg4 = %c0_i32 to %1 step %c1_i32 iter_args(%arg5 = %0) -> (vector<8x1xf32>)  : i32 {
      %cst_13 = arith.constant 0.000000e+00 : f32
      %14 = vector.broadcast %cst_13 : f32 to vector<8x8xf32>
      %c0_i32_14 = arith.constant 0 : i32
      %15 = arith.addi %arg4, %c0_i32_14 : i32
      %c0 = arith.constant 0 : index
      %c0_15 = arith.constant 0 : index
      %16 = arith.index_cast %15 : i32 to index
      %c0_16 = arith.constant 0 : index
      %c0_17 = arith.constant 0 : index
      %17 = vector.load %arg2[%c0, %c0_15, %16, %c0_16, %c0_17] : memref<1x4x9x4x9xbf16, #tpu.memory_space<vmem>>, vector<1x1x1x4x8xbf16>
      %18 = vector.shape_cast %17 : vector<1x1x1x4x8xbf16> to vector<4x8xbf16>
      %c0_18 = arith.constant 0 : index
      %c0_19 = arith.constant 0 : index
      %c0_20 = arith.constant 0 : index
      %19 = vector.load %arg1[%c0_18, %c0_19, %c0_20] : memref<16x8x4xbf16, #tpu.memory_space<vmem>>, vector<1x8x4xbf16>
      %20 = vector.shape_cast %19 : vector<1x8x4xbf16> to vector<8x4xbf16>
      %cst_21 = arith.constant dense<0.000000e+00> : vector<8x8xf32>
      %21 = tpu.matmul %20, %18, %cst_21 {dimension_numbers = #tpu.dot_dimension_numbers<[1], [0], [0], [1], [0, 0, 1, 1], [], []>} : vector<8x4xbf16>, vector<4x8xbf16>, vector<8x8xf32> -> vector<8x8xf32>
      %22 = arith.addf %14, %21 : vector<8x8xf32>
      %c0_i32_22 = arith.constant 0 : i32
      %23 = arith.addi %arg4, %c0_i32_22 : i32
      %c0_23 = arith.constant 0 : index
      %c1 = arith.constant 1 : index
      %24 = arith.index_cast %23 : i32 to index
      %c0_24 = arith.constant 0 : index
      %c0_25 = arith.constant 0 : index
      %25 = vector.load %arg2[%c0_23, %c1, %24, %c0_24, %c0_25] : memref<1x4x9x4x9xbf16, #tpu.memory_space<vmem>>, vector<1x1x1x4x8xbf16>
      %26 = vector.shape_cast %25 : vector<1x1x1x4x8xbf16> to vector<4x8xbf16>
      %c1_26 = arith.constant 1 : index
      %c0_27 = arith.constant 0 : index
      %c0_28 = arith.constant 0 : index
      %27 = vector.load %arg1[%c1_26, %c0_27, %c0_28] : memref<16x8x4xbf16, #tpu.memory_space<vmem>>, vector<1x8x4xbf16>
      %28 = vector.shape_cast %27 : vector<1x8x4xbf16> to vector<8x4xbf16>
      %cst_29 = arith.constant dense<0.000000e+00> : vector<8x8xf32>
      %29 = tpu.matmul %28, %26, %cst_29 {dimension_numbers = #tpu.dot_dimension_numbers<[1], [0], [0], [1], [0, 0, 1, 1], [], []>} : vector<8x4xbf16>, vector<4x8xbf16>, vector<8x8xf32> -> vector<8x8xf32>
      %30 = arith.addf %22, %29 : vector<8x8xf32>
      %c0_i32_30 = arith.constant 0 : i32
      %31 = arith.addi %arg4, %c0_i32_30 : i32
      %c0_31 = arith.constant 0 : index
      %c0_32 = arith.constant 0 : index
      %32 = arith.index_cast %31 : i32 to index
      %c0_33 = arith.constant 0 : index
      %c1_34 = arith.constant 1 : index
      %33 = vector.load %arg2[%c0_31, %c0_32, %32, %c0_33, %c1_34] : memref<1x4x9x4x9xbf16, #tpu.memory_space<vmem>>, vector<1x1x1x4x8xbf16>
      %34 = vector.shape_cast %33 : vector<1x1x1x4x8xbf16> to vector<4x8xbf16>
      %c2 = arith.constant 2 : index
      %c0_35 = arith.constant 0 : index
      %c0_36 = arith.constant 0 : index
      %35 = vector.load %arg1[%c2, %c0_35, %c0_36] : memref<16x8x4xbf16, #tpu.memory_space<vmem>>, vector<1x8x4xbf16>
      %36 = vector.shape_cast %35 : vector<1x8x4xbf16> to vector<8x4xbf16>
      %cst_37 = arith.constant dense<0.000000e+00> : vector<8x8xf32>
      %37 = tpu.matmul %36, %34, %cst_37 {dimension_numbers = #tpu.dot_dimension_numbers<[1], [0], [0], [1], [0, 0, 1, 1], [], []>} : vector<8x4xbf16>, vector<4x8xbf16>, vector<8x8xf32> -> vector<8x8xf32>
      %38 = arith.addf %30, %37 : vector<8x8xf32>
      %c0_i32_38 = arith.constant 0 : i32
      %39 = arith.addi %arg4, %c0_i32_38 : i32
      %c0_39 = arith.constant 0 : index
      %c1_40 = arith.constant 1 : index
      %40 = arith.index_cast %39 : i32 to index
      %c0_41 = arith.constant 0 : index
      %c1_42 = arith.constant 1 : index
      %41 = vector.load %arg2[%c0_39, %c1_40, %40, %c0_41, %c1_42] : memref<1x4x9x4x9xbf16, #tpu.memory_space<vmem>>, vector<1x1x1x4x8xbf16>
      %42 = vector.shape_cast %41 : vector<1x1x1x4x8xbf16> to vector<4x8xbf16>
      %c3 = arith.constant 3 : index
      %c0_43 = arith.constant 0 : index
      %c0_44 = arith.constant 0 : index
      %43 = vector.load %arg1[%c3, %c0_43, %c0_44] : memref<16x8x4xbf16, #tpu.memory_space<vmem>>, vector<1x8x4xbf16>
      %44 = vector.shape_cast %43 : vector<1x8x4xbf16> to vector<8x4xbf16>
      %cst_45 = arith.constant dense<0.000000e+00> : vector<8x8xf32>
      %45 = tpu.matmul %44, %42, %cst_45 {dimension_numbers = #tpu.dot_dimension_numbers<[1], [0], [0], [1], [0, 0, 1, 1], [], []>} : vector<8x4xbf16>, vector<4x8xbf16>, vector<8x8xf32> -> vector<8x8xf32>
      %46 = arith.addf %38, %45 : vector<8x8xf32>
      %c0_i32_46 = arith.constant 0 : i32
      %47 = arith.addi %arg4, %c0_i32_46 : i32
      %c0_47 = arith.constant 0 : index
      %c2_48 = arith.constant 2 : index
      %48 = arith.index_cast %47 : i32 to index
      %c0_49 = arith.constant 0 : index
      %c0_50 = arith.constant 0 : index
      %49 = vector.load %arg2[%c0_47, %c2_48, %48, %c0_49, %c0_50] : memref<1x4x9x4x9xbf16, #tpu.memory_space<vmem>>, vector<1x1x1x4x8xbf16>
      %50 = vector.shape_cast %49 : vector<1x1x1x4x8xbf16> to vector<4x8xbf16>
      %c4 = arith.constant 4 : index
      %c0_51 = arith.constant 0 : index
      %c0_52 = arith.constant 0 : index
      %51 = vector.load %arg1[%c4, %c0_51, %c0_52] : memref<16x8x4xbf16, #tpu.memory_space<vmem>>, vector<1x8x4xbf16>
      %52 = vector.shape_cast %51 : vector<1x8x4xbf16> to vector<8x4xbf16>
      %cst_53 = arith.constant dense<0.000000e+00> : vector<8x8xf32>
      %53 = tpu.matmul %52, %50, %cst_53 {dimension_numbers = #tpu.dot_dimension_numbers<[1], [0], [0], [1], [0, 0, 1, 1], [], []>} : vector<8x4xbf16>, vector<4x8xbf16>, vector<8x8xf32> -> vector<8x8xf32>
      %54 = arith.addf %46, %53 : vector<8x8xf32>
      %c0_i32_54 = arith.constant 0 : i32
      %55 = arith.addi %arg4, %c0_i32_54 : i32
      %c0_55 = arith.constant 0 : index
      %c3_56 = arith.constant 3 : index
      %56 = arith.index_cast %55 : i32 to index
      %c0_57 = arith.constant 0 : index
      %c0_58 = arith.constant 0 : index
      %57 = vector.load %arg2[%c0_55, %c3_56, %56, %c0_57, %c0_58] : memref<1x4x9x4x9xbf16, #tpu.memory_space<vmem>>, vector<1x1x1x4x8xbf16>
      %58 = vector.shape_cast %57 : vector<1x1x1x4x8xbf16> to vector<4x8xbf16>
      %c5 = arith.constant 5 : index
      %c0_59 = arith.constant 0 : index
      %c0_60 = arith.constant 0 : index
      %59 = vector.load %arg1[%c5, %c0_59, %c0_60] : memref<16x8x4xbf16, #tpu.memory_space<vmem>>, vector<1x8x4xbf16>
      %60 = vector.shape_cast %59 : vector<1x8x4xbf16> to vector<8x4xbf16>
      %cst_61 = arith.constant dense<0.000000e+00> : vector<8x8xf32>
      %61 = tpu.matmul %60, %58, %cst_61 {dimension_numbers = #tpu.dot_dimension_numbers<[1], [0], [0], [1], [0, 0, 1, 1], [], []>} : vector<8x4xbf16>, vector<4x8xbf16>, vector<8x8xf32> -> vector<8x8xf32>
      %62 = arith.addf %54, %61 : vector<8x8xf32>
      %c0_i32_62 = arith.constant 0 : i32
      %63 = arith.addi %arg4, %c0_i32_62 : i32
      %c0_63 = arith.constant 0 : index
      %c2_64 = arith.constant 2 : index
      %64 = arith.index_cast %63 : i32 to index
      %c0_65 = arith.constant 0 : index
      %c1_66 = arith.constant 1 : index
      %65 = vector.load %arg2[%c0_63, %c2_64, %64, %c0_65, %c1_66] : memref<1x4x9x4x9xbf16, #tpu.memory_space<vmem>>, vector<1x1x1x4x8xbf16>
      %66 = vector.shape_cast %65 : vector<1x1x1x4x8xbf16> to vector<4x8xbf16>
      %c6 = arith.constant 6 : index
      %c0_67 = arith.constant 0 : index
      %c0_68 = arith.constant 0 : index
      %67 = vector.load %arg1[%c6, %c0_67, %c0_68] : memref<16x8x4xbf16, #tpu.memory_space<vmem>>, vector<1x8x4xbf16>
      %68 = vector.shape_cast %67 : vector<1x8x4xbf16> to vector<8x4xbf16>
      %cst_69 = arith.constant dense<0.000000e+00> : vector<8x8xf32>
      %69 = tpu.matmul %68, %66, %cst_69 {dimension_numbers = #tpu.dot_dimension_numbers<[1], [0], [0], [1], [0, 0, 1, 1], [], []>} : vector<8x4xbf16>, vector<4x8xbf16>, vector<8x8xf32> -> vector<8x8xf32>
      %70 = arith.addf %62, %69 : vector<8x8xf32>
      %c0_i32_70 = arith.constant 0 : i32
      %71 = arith.addi %arg4, %c0_i32_70 : i32
      %c0_71 = arith.constant 0 : index
      %c3_72 = arith.constant 3 : index
      %72 = arith.index_cast %71 : i32 to index
      %c0_73 = arith.constant 0 : index
      %c1_74 = arith.constant 1 : index
      %73 = vector.load %arg2[%c0_71, %c3_72, %72, %c0_73, %c1_74] : memref<1x4x9x4x9xbf16, #tpu.memory_space<vmem>>, vector<1x1x1x4x8xbf16>
      %74 = vector.shape_cast %73 : vector<1x1x1x4x8xbf16> to vector<4x8xbf16>
      %c7 = arith.constant 7 : index
      %c0_75 = arith.constant 0 : index
      %c0_76 = arith.constant 0 : index
      %75 = vector.load %arg1[%c7, %c0_75, %c0_76] : memref<16x8x4xbf16, #tpu.memory_space<vmem>>, vector<1x8x4xbf16>
      %76 = vector.shape_cast %75 : vector<1x8x4xbf16> to vector<8x4xbf16>
      %cst_77 = arith.constant dense<0.000000e+00> : vector<8x8xf32>
      %77 = tpu.matmul %76, %74, %cst_77 {dimension_numbers = #tpu.dot_dimension_numbers<[1], [0], [0], [1], [0, 0, 1, 1], [], []>} : vector<8x4xbf16>, vector<4x8xbf16>, vector<8x8xf32> -> vector<8x8xf32>
      %78 = arith.addf %70, %77 : vector<8x8xf32>
      %c1_i32_78 = arith.constant 1 : i32
      %79 = arith.addi %arg4, %c1_i32_78 : i32
      %c0_79 = arith.constant 0 : index
      %c0_80 = arith.constant 0 : index
      %80 = arith.index_cast %79 : i32 to index
      %c0_81 = arith.constant 0 : index
      %c0_82 = arith.constant 0 : index
      %81 = vector.load %arg2[%c0_79, %c0_80, %80, %c0_81, %c0_82] : memref<1x4x9x4x9xbf16, #tpu.memory_space<vmem>>, vector<1x1x1x4x8xbf16>
      %82 = vector.shape_cast %81 : vector<1x1x1x4x8xbf16> to vector<4x8xbf16>
      %c8 = arith.constant 8 : index
      %c0_83 = arith.constant 0 : index
      %c0_84 = arith.constant 0 : index
      %83 = vector.load %arg1[%c8, %c0_83, %c0_84] : memref<16x8x4xbf16, #tpu.memory_space<vmem>>, vector<1x8x4xbf16>
      %84 = vector.shape_cast %83 : vector<1x8x4xbf16> to vector<8x4xbf16>
      %cst_85 = arith.constant dense<0.000000e+00> : vector<8x8xf32>
      %85 = tpu.matmul %84, %82, %cst_85 {dimension_numbers = #tpu.dot_dimension_numbers<[1], [0], [0], [1], [0, 0, 1, 1], [], []>} : vector<8x4xbf16>, vector<4x8xbf16>, vector<8x8xf32> -> vector<8x8xf32>
      %86 = arith.addf %78, %85 : vector<8x8xf32>
      %c1_i32_86 = arith.constant 1 : i32
      %87 = arith.addi %arg4, %c1_i32_86 : i32
      %c0_87 = arith.constant 0 : index
      %c1_88 = arith.constant 1 : index
      %88 = arith.index_cast %87 : i32 to index
      %c0_89 = arith.constant 0 : index
      %c0_90 = arith.constant 0 : index
      %89 = vector.load %arg2[%c0_87, %c1_88, %88, %c0_89, %c0_90] : memref<1x4x9x4x9xbf16, #tpu.memory_space<vmem>>, vector<1x1x1x4x8xbf16>
      %90 = vector.shape_cast %89 : vector<1x1x1x4x8xbf16> to vector<4x8xbf16>
      %c9 = arith.constant 9 : index
      %c0_91 = arith.constant 0 : index
      %c0_92 = arith.constant 0 : index
      %91 = vector.load %arg1[%c9, %c0_91, %c0_92] : memref<16x8x4xbf16, #tpu.memory_space<vmem>>, vector<1x8x4xbf16>
      %92 = vector.shape_cast %91 : vector<1x8x4xbf16> to vector<8x4xbf16>
      %cst_93 = arith.constant dense<0.000000e+00> : vector<8x8xf32>
      %93 = tpu.matmul %92, %90, %cst_93 {dimension_numbers = #tpu.dot_dimension_numbers<[1], [0], [0], [1], [0, 0, 1, 1], [], []>} : vector<8x4xbf16>, vector<4x8xbf16>, vector<8x8xf32> -> vector<8x8xf32>
      %94 = arith.addf %86, %93 : vector<8x8xf32>
      %c1_i32_94 = arith.constant 1 : i32
      %95 = arith.addi %arg4, %c1_i32_94 : i32
      %c0_95 = arith.constant 0 : index
      %c0_96 = arith.constant 0 : index
      %96 = arith.index_cast %95 : i32 to index
      %c0_97 = arith.constant 0 : index
      %c1_98 = arith.constant 1 : index
      %97 = vector.load %arg2[%c0_95, %c0_96, %96, %c0_97, %c1_98] : memref<1x4x9x4x9xbf16, #tpu.memory_space<vmem>>, vector<1x1x1x4x8xbf16>
      %98 = vector.shape_cast %97 : vector<1x1x1x4x8xbf16> to vector<4x8xbf16>
      %c10 = arith.constant 10 : index
      %c0_99 = arith.constant 0 : index
      %c0_100 = arith.constant 0 : index
      %99 = vector.load %arg1[%c10, %c0_99, %c0_100] : memref<16x8x4xbf16, #tpu.memory_space<vmem>>, vector<1x8x4xbf16>
      %100 = vector.shape_cast %99 : vector<1x8x4xbf16> to vector<8x4xbf16>
      %cst_101 = arith.constant dense<0.000000e+00> : vector<8x8xf32>
      %101 = tpu.matmul %100, %98, %cst_101 {dimension_numbers = #tpu.dot_dimension_numbers<[1], [0], [0], [1], [0, 0, 1, 1], [], []>} : vector<8x4xbf16>, vector<4x8xbf16>, vector<8x8xf32> -> vector<8x8xf32>
      %102 = arith.addf %94, %101 : vector<8x8xf32>
      %c1_i32_102 = arith.constant 1 : i32
      %103 = arith.addi %arg4, %c1_i32_102 : i32
      %c0_103 = arith.constant 0 : index
      %c1_104 = arith.constant 1 : index
      %104 = arith.index_cast %103 : i32 to index
      %c0_105 = arith.constant 0 : index
      %c1_106 = arith.constant 1 : index
      %105 = vector.load %arg2[%c0_103, %c1_104, %104, %c0_105, %c1_106] : memref<1x4x9x4x9xbf16, #tpu.memory_space<vmem>>, vector<1x1x1x4x8xbf16>
      %106 = vector.shape_cast %105 : vector<1x1x1x4x8xbf16> to vector<4x8xbf16>
      %c11 = arith.constant 11 : index
      %c0_107 = arith.constant 0 : index
      %c0_108 = arith.constant 0 : index
      %107 = vector.load %arg1[%c11, %c0_107, %c0_108] : memref<16x8x4xbf16, #tpu.memory_space<vmem>>, vector<1x8x4xbf16>
      %108 = vector.shape_cast %107 : vector<1x8x4xbf16> to vector<8x4xbf16>
      %cst_109 = arith.constant dense<0.000000e+00> : vector<8x8xf32>
      %109 = tpu.matmul %108, %106, %cst_109 {dimension_numbers = #tpu.dot_dimension_numbers<[1], [0], [0], [1], [0, 0, 1, 1], [], []>} : vector<8x4xbf16>, vector<4x8xbf16>, vector<8x8xf32> -> vector<8x8xf32>
      %110 = arith.addf %102, %109 : vector<8x8xf32>
      %c1_i32_110 = arith.constant 1 : i32
      %111 = arith.addi %arg4, %c1_i32_110 : i32
      %c0_111 = arith.constant 0 : index
      %c2_112 = arith.constant 2 : index
      %112 = arith.index_cast %111 : i32 to index
      %c0_113 = arith.constant 0 : index
      %c0_114 = arith.constant 0 : index
      %113 = vector.load %arg2[%c0_111, %c2_112, %112, %c0_113, %c0_114] : memref<1x4x9x4x9xbf16, #tpu.memory_space<vmem>>, vector<1x1x1x4x8xbf16>
      %114 = vector.shape_cast %113 : vector<1x1x1x4x8xbf16> to vector<4x8xbf16>
      %c12 = arith.constant 12 : index
      %c0_115 = arith.constant 0 : index
      %c0_116 = arith.constant 0 : index
      %115 = vector.load %arg1[%c12, %c0_115, %c0_116] : memref<16x8x4xbf16, #tpu.memory_space<vmem>>, vector<1x8x4xbf16>
      %116 = vector.shape_cast %115 : vector<1x8x4xbf16> to vector<8x4xbf16>
      %cst_117 = arith.constant dense<0.000000e+00> : vector<8x8xf32>
      %117 = tpu.matmul %116, %114, %cst_117 {dimension_numbers = #tpu.dot_dimension_numbers<[1], [0], [0], [1], [0, 0, 1, 1], [], []>} : vector<8x4xbf16>, vector<4x8xbf16>, vector<8x8xf32> -> vector<8x8xf32>
      %118 = arith.addf %110, %117 : vector<8x8xf32>
      %c1_i32_118 = arith.constant 1 : i32
      %119 = arith.addi %arg4, %c1_i32_118 : i32
      %c0_119 = arith.constant 0 : index
      %c3_120 = arith.constant 3 : index
      %120 = arith.index_cast %119 : i32 to index
      %c0_121 = arith.constant 0 : index
      %c0_122 = arith.constant 0 : index
      %121 = vector.load %arg2[%c0_119, %c3_120, %120, %c0_121, %c0_122] : memref<1x4x9x4x9xbf16, #tpu.memory_space<vmem>>, vector<1x1x1x4x8xbf16>
      %122 = vector.shape_cast %121 : vector<1x1x1x4x8xbf16> to vector<4x8xbf16>
      %c13 = arith.constant 13 : index
      %c0_123 = arith.constant 0 : index
      %c0_124 = arith.constant 0 : index
      %123 = vector.load %arg1[%c13, %c0_123, %c0_124] : memref<16x8x4xbf16, #tpu.memory_space<vmem>>, vector<1x8x4xbf16>
      %124 = vector.shape_cast %123 : vector<1x8x4xbf16> to vector<8x4xbf16>
      %cst_125 = arith.constant dense<0.000000e+00> : vector<8x8xf32>
      %125 = tpu.matmul %124, %122, %cst_125 {dimension_numbers = #tpu.dot_dimension_numbers<[1], [0], [0], [1], [0, 0, 1, 1], [], []>} : vector<8x4xbf16>, vector<4x8xbf16>, vector<8x8xf32> -> vector<8x8xf32>
      %126 = arith.addf %118, %125 : vector<8x8xf32>
      %c1_i32_126 = arith.constant 1 : i32
      %127 = arith.addi %arg4, %c1_i32_126 : i32
      %c0_127 = arith.constant 0 : index
      %c2_128 = arith.constant 2 : index
      %128 = arith.index_cast %127 : i32 to index
      %c0_129 = arith.constant 0 : index
      %c1_130 = arith.constant 1 : index
      %129 = vector.load %arg2[%c0_127, %c2_128, %128, %c0_129, %c1_130] : memref<1x4x9x4x9xbf16, #tpu.memory_space<vmem>>, vector<1x1x1x4x8xbf16>
      %130 = vector.shape_cast %129 : vector<1x1x1x4x8xbf16> to vector<4x8xbf16>
      %c14 = arith.constant 14 : index
      %c0_131 = arith.constant 0 : index
      %c0_132 = arith.constant 0 : index
      %131 = vector.load %arg1[%c14, %c0_131, %c0_132] : memref<16x8x4xbf16, #tpu.memory_space<vmem>>, vector<1x8x4xbf16>
      %132 = vector.shape_cast %131 : vector<1x8x4xbf16> to vector<8x4xbf16>
      %cst_133 = arith.constant dense<0.000000e+00> : vector<8x8xf32>
      %133 = tpu.matmul %132, %130, %cst_133 {dimension_numbers = #tpu.dot_dimension_numbers<[1], [0], [0], [1], [0, 0, 1, 1], [], []>} : vector<8x4xbf16>, vector<4x8xbf16>, vector<8x8xf32> -> vector<8x8xf32>
      %134 = arith.addf %126, %133 : vector<8x8xf32>
      %c1_i32_134 = arith.constant 1 : i32
      %135 = arith.addi %arg4, %c1_i32_134 : i32
      %c0_135 = arith.constant 0 : index
      %c3_136 = arith.constant 3 : index
      %136 = arith.index_cast %135 : i32 to index
      %c0_137 = arith.constant 0 : index
      %c1_138 = arith.constant 1 : index
      %137 = vector.load %arg2[%c0_135, %c3_136, %136, %c0_137, %c1_138] : memref<1x4x9x4x9xbf16, #tpu.memory_space<vmem>>, vector<1x1x1x4x8xbf16>
      %138 = vector.shape_cast %137 : vector<1x1x1x4x8xbf16> to vector<4x8xbf16>
      %c15 = arith.constant 15 : index
      %c0_139 = arith.constant 0 : index
      %c0_140 = arith.constant 0 : index
      %139 = vector.load %arg1[%c15, %c0_139, %c0_140] : memref<16x8x4xbf16, #tpu.memory_space<vmem>>, vector<1x8x4xbf16>
      %140 = vector.shape_cast %139 : vector<1x8x4xbf16> to vector<8x4xbf16>
      %cst_141 = arith.constant dense<0.000000e+00> : vector<8x8xf32>
      %141 = tpu.matmul %140, %138, %cst_141 {dimension_numbers = #tpu.dot_dimension_numbers<[1], [0], [0], [1], [0, 0, 1, 1], [], []>} : vector<8x4xbf16>, vector<4x8xbf16>, vector<8x8xf32> -> vector<8x8xf32>
      %142 = arith.addf %134, %141 : vector<8x8xf32>
      %c0_142 = arith.constant 0 : index
      %143 = arith.index_cast %arg4 : i32 to index
      %c0_143 = arith.constant 0 : index
      %c0_144 = arith.constant 0 : index
      %144 = vector.load %arg3[%c0_142, %143, %c0_143, %c0_144] : memref<1x8x8x8xf32, #tpu.memory_space<vmem>>, vector<1x1x8x8xf32>
      %145 = vector.shape_cast %144 : vector<1x1x8x8xf32> to vector<8x8xf32>
      %146 = vector.shape_cast %142 : vector<8x8xf32> to vector<1x1x8x8xf32>
      tpu.vector_store %arg3[%c0_142, %143, %c0_143, %c0_144], %146 {strides = array<i32>} : memref<1x8x8x8xf32, #tpu.memory_space<vmem>>, vector<1x1x8x8xf32>,
      %cst_145 = arith.constant dense<0.000000e+00> : vector<8xf32>
      %147 = vector.multi_reduction <add>, %142, %cst_145 [1] : vector<8x8xf32> to vector<8xf32>
      %148 = vector.shape_cast %147 : vector<8xf32> to vector<8x1xf32>
      %149 = arith.addf %arg5, %148 : vector<8x1xf32>
      scf.yield %149 : vector<8x1xf32>
    }
    %c8_i32_0 = arith.constant 8 : i32
    %cst_1 = arith.constant 1.562500e-02 : f32
    %3 = vector.broadcast %cst_1 : f32 to vector<8x1xf32>
    %4 = arith.mulf %2, %3 : vector<8x1xf32>
    %cst_2 = arith.constant 0.000000e+00 : f32
    %5 = vector.broadcast %cst_2 : f32 to vector<8x1xf32>
    %c0_i32_3 = arith.constant 0 : i32
    %c8_i32_4 = arith.constant 8 : i32
    %6 = arith.addi %c0_i32_3, %c8_i32_4 : i32
    %c1_i32_5 = arith.constant 1 : i32
    %7 = scf.for %arg4 = %c0_i32_3 to %6 step %c1_i32_5 iter_args(%arg5 = %5) -> (vector<8x1xf32>)  : i32 {
      %c0 = arith.constant 0 : index
      %14 = arith.index_cast %arg4 : i32 to index
      %c0_13 = arith.constant 0 : index
      %c0_14 = arith.constant 0 : index
      %15 = vector.load %arg3[%c0, %14, %c0_13, %c0_14] : memref<1x8x8x8xf32, #tpu.memory_space<vmem>>, vector<1x1x8x8xf32>
      %16 = vector.shape_cast %15 : vector<1x1x8x8xf32> to vector<8x8xf32>
      %17 = vector.broadcast %4 : vector<8x1xf32> to vector<8x8xf32>
      %18 = arith.subf %16, %17 : vector<8x8xf32>
      %19 = arith.mulf %18, %18 : vector<8x8xf32>
      %cst_15 = arith.constant dense<0.000000e+00> : vector<8xf32>
      %20 = vector.multi_reduction <add>, %19, %cst_15 [1] : vector<8x8xf32> to vector<8xf32>
      %21 = vector.shape_cast %20 : vector<8xf32> to vector<8x1xf32>
      %22 = arith.addf %arg5, %21 : vector<8x1xf32>
      scf.yield %22 : vector<8x1xf32>
    }
    %c8_i32_6 = arith.constant 8 : i32
    %cst_7 = arith.constant 1.562500e-02 : f32
    %8 = vector.broadcast %cst_7 : f32 to vector<8x1xf32>
    %9 = arith.mulf %7, %8 : vector<8x1xf32>
    %cst_8 = arith.constant 9.99999974E-6 : f32
    %10 = vector.broadcast %cst_8 : f32 to vector<8x1xf32>
    %11 = arith.addf %9, %10 : vector<8x1xf32>
    %12 = math.rsqrt %11 : vector<8x1xf32>
    %c0_i32_9 = arith.constant 0 : i32
    %c8_i32_10 = arith.constant 8 : i32
    %13 = arith.addi %c0_i32_9, %c8_i32_10 : i32
    %c1_i32_11 = arith.constant 1 : i32
    scf.for %arg4 = %c0_i32_9 to %13 step %c1_i32_11  : i32 {
      %c0 = arith.constant 0 : index
      %14 = arith.index_cast %arg4 : i32 to index
      %c0_13 = arith.constant 0 : index
      %c0_14 = arith.constant 0 : index
      %15 = vector.load %arg3[%c0, %14, %c0_13, %c0_14] : memref<1x8x8x8xf32, #tpu.memory_space<vmem>>, vector<1x1x8x8xf32>
      %16 = vector.shape_cast %15 : vector<1x1x8x8xf32> to vector<8x8xf32>
      %17 = vector.broadcast %4 : vector<8x1xf32> to vector<8x8xf32>
      %18 = arith.subf %16, %17 : vector<8x8xf32>
      %19 = vector.broadcast %12 : vector<8x1xf32> to vector<8x8xf32>
      %20 = arith.mulf %18, %19 : vector<8x8xf32>
      %cst_15 = arith.constant 0.000000e+00 : f32
      %21 = vector.broadcast %cst_15 : f32 to vector<8x8xf32>
      %22 = arith.maximumf %20, %21 : vector<8x8xf32>
      %c0_16 = arith.constant 0 : index
      %23 = arith.index_cast %arg4 : i32 to index
      %c0_17 = arith.constant 0 : index
      %c0_18 = arith.constant 0 : index
      %24 = vector.load %arg3[%c0_16, %23, %c0_17, %c0_18] : memref<1x8x8x8xf32, #tpu.memory_space<vmem>>, vector<1x1x8x8xf32>
      %25 = vector.shape_cast %24 : vector<1x1x8x8xf32> to vector<8x8xf32>
      %26 = vector.shape_cast %22 : vector<8x8xf32> to vector<1x1x8x8xf32>
      tpu.vector_store %arg3[%c0_16, %23, %c0_17, %c0_18], %26 {strides = array<i32>} : memref<1x8x8x8xf32, #tpu.memory_space<vmem>>, vector<1x1x8x8xf32>,
    }
    %c8_i32_12 = arith.constant 8 : i32
    return
  }
  func.func @transform_0(%arg0: i32) -> (i32, i32, i32) {
    %c0_i32 = arith.constant 0 : i32
    %c0_i32_0 = arith.constant 0 : i32
    %c0_i32_1 = arith.constant 0 : i32
    %c0_i32_2 = arith.constant 0 : i32
    return %c0_i32, %c0_i32_0, %c0_i32_1 : i32, i32, i32
  }
  func.func @transform_1(%arg0: i32) -> (i32, i32, i32, i32, i32) {
    %c0_i32 = arith.constant 0 : i32
    %c0_i32_0 = arith.constant 0 : i32
    %c0_i32_1 = arith.constant 0 : i32
    %c0_i32_2 = arith.constant 0 : i32
    %c0_i32_3 = arith.constant 0 : i32
    return %arg0, %c0_i32, %c0_i32_0, %c0_i32_1, %c0_i32_2 : i32, i32, i32, i32, i32
  }
  func.func @transform_2(%arg0: i32) -> (i32, i32, i32, i32) {
    %c0_i32 = arith.constant 0 : i32
    %c0_i32_0 = arith.constant 0 : i32
    %c0_i32_1 = arith.constant 0 : i32
    %c0_i32_2 = arith.constant 0 : i32
    return %arg0, %c0_i32, %c0_i32_0, %c0_i32_1 : i32, i32, i32, i32
  }
}

</mosaic_0001>

<bundles_post_ra>
// kernel: tpu_custom_call.1
= control target key start
LH: loop header
LB: loop body
LE: loop exit
PB: predicated region body
PF: predicated region fallthrough
CT: control target
= control target key end

     0   :  { %7 = vsyncpa [#allocation3], 0  ;;  %s1361_s0 = inlined_call_operand.vmem [shape: bf16[16,8,4], index: 0, kind: input, shape index: {}]   ;;  %s1362_s1 = inlined_call_operand.hbm [shape: bf16[2,4,9,4,9], index: 1, kind: input, shape index: {}]   ;;  %s1363_s2 = inlined_call_operand.hbm [shape: f32[2,8,8,8], index: 2, kind: output, shape index: {}]  }
   0x1   :  { %9 = vsyncpa [#allocation3 + $0x1], 0 }
   0x2   :  { %10 = vsyncpa [#allocation4], 0 }
   0x3   :  { %12 = vsyncpa [#allocation4 + $0x1], 0  ;;  %s1112_s9 = smov 0   ;;  %s1114_s10 = smov 0  }
   0x4   :  { %s1116_s11 = smov 0   ;;  %s1118_s12 = smov 0  }
   0x5 LB: > { %s1133_s13 = sadd.s32 4294967295, %s1070_s12   ;;  %s793_s14 = sadd.s32 4294967294, %s1070_s12   ;;  %s1070_s12 = sphi %s1118_s12, %s1374_s12   ;;  %s1066_s11 = sphi %s1116_s11, %s1373_s11   ;;  %s1062_s10 = sphi %s1114_s10, %s1372_s10   ;;  %s1058_s9 = sphi %s1112_s9, %s1371_s9  }
   0x6   : > { %s1137_s15 = sadd.s32 1, %s1070_s12   ;;  %s46_s16 = sadd.s32 1, %s1066_s11 }
   0x7   : > { %s43_s17 = ssub.s32 %s1070_s12, %s1137_s15  ;;  %p53_p0 = scmp.ne.s32.totalorder %s1066_s11, %s1062_s10 }
   0x8   : > { %p44_p1 = scmp.eq.s32.totalorder %s43_s17, 0  ;;  %p54_p2 = scmp.eq.s32.totalorder %s1070_s12, 0 }
   0x9   : > { %p59_p3 = scmp.ne.s32.totalorder %s1062_s10, %s1058_s9  ;;  %p60_p4 = scmp.eq.s32.totalorder %s1133_s13, 0 }
   0xa   : > { %s1149_s18 = scalar_select %p44_p1, %s1066_s11, %s46_s16  }
   0xb   : > { %p55_p5 = por %p54_p2, %p53_p0  ;;  %p1151_p6 = por %p60_p4, %p59_p3 }
   0xc   : > { %p83_p7 = scmp.eq.s32.totalorder %s1133_s13, 1  ;;  %p89_p8 = scmp.eq.s32.totalorder %s793_s14, 1 }
   0xd   : > { %p795_p9 = scmp.ge.s32.totalorder %s1070_s12, 2  ;;  %p873_p10 = scmp.lt.s32.totalorder %s1070_s12, 2 }
   0xe   : > { %p1158_p11 = por %p83_p7, %p53_p0  ;;  %p1162_p12 = por %p89_p8, %p59_p3 }
   0xf   : > { %s112_s22 = sand.u32 1, %s1066_s11   ;;  %s859_s23 = smul.u32 72, %s1070_s12 }
  0x10   : > { %s858_s24 = smul.u32 72, %s112_s22  ;;  %p1171_p13 = pnand %p873_p10, %p55_p5 }
  0x11   : > { %s121_s27 = scalar_lea.hbm %s1362_s1, %s859_s23  ;;  %s113_s4 = scalar_lea.sflag [#allocation3], %s112_s22 }
  0x12   : > { %s122_s29 = sshll.u32 %s121_s27, 4  ;;  %s116_s30 = scalar_lea.vmem [#allocation2], %s858_s24  ;;  %s123_s29 = int_to_ptr.hbm [resolvable:$true] %s122_s29 }
  0x13   : > { %s124_s3 = sshll.u32 %s116_s30, 4  ;;  %s954_s5 = sshra.s32 %s123_s29, 4  ;;  %s125_s3 = int_to_ptr.vmem [resolvable:$true] %s124_s3  ;;  %s955_s5 = int_to_ptr.hbm [resolvable:$true] %s954_s5 }
  0x14   : > { %s956_s6 = scalar_lea.hbm %s955_s5, 72  ;;  %p958_p1 = pneg %p1171_p13 }
  0x15   : > { %p957_p0 = scmp.ne.s32.totalorder %s955_s5, %s956_s6  ;;  %s961_s14 = scalar_lea.hbm %s1362_s1, 144 }
  0x16   : > { %p962_p4 = scmp.lt.s32.totalorder %s955_s5, %s1362_s1  ;;  %p963_p5 = scmp.lt.s32.totalorder %s961_s14, %s956_s6 }
  0x17   : > { %p959_p2 = pnand %p958_p1, %p957_p0 }
  0x18   : > { %p964_p7 = por %p963_p5, %p962_p4 }
  0x19   : > { %p960_p3 = pneg %p959_p2 }
  0x1b   : > { %p965_p8 = pnand %p964_p7, %p960_p3 }
  0x1d   : > { %968 = shalt.err (!%p965_p8)
}
  0x1e   : > { %s1092_s22 = smov 32   ;;  %s1093_s23 = smov 2  }
  0x1f   : > { %868 = dma.hbm_to_vmem [thread:$0]  (!%p1171_p13), %s123_s29, 1152, %s125_s3, %s113_s4, %s1092_s22, %s1092_s22, %s1093_s23  }
  0x20   : > { %p797_p10 = scmp.ge.s32.totalorder %s1070_s12, 1  ;;  %p132_p0 = scmp.lt.s32.totalorder %s1070_s12, 3 }
  0x22   : > { %p133_p1 = pnand %p797_p10, %p132_p0 }
  0x23   : > { %s1188_s24 = sand.u32 (!%p133_p1), 1, %s1062_s10  }
  0x24   : > { %136 = sbr.rel (%p133_p1) target bundleno = 650 (0x28a), region = 28  ;;  %s139_s26 = scalar_lea.sflag (!%p133_p1), [#allocation3], %s1188_s24 }
  0x25   : > { %s860_s25 = smul.u32 (!%p133_p1), 72, %s1188_s24 }
  0x27   : > { %s1192_s27 = scalar_lea.vmem (!%p133_p1), [#allocation2], %s860_s25 }
  0x29   : > { %1049 = dma.done.wait (%p1151_p6), %s139_s26, 1152  }
  0x2a   : > { %1051 = vsyncadd (%p1151_p6), %s139_s26, 4294966144  ;;  %s798_s28 = sshll.u32 %s1188_s24, 6  ;;  %v1201_v0 = vmov 0.0   ;;  %s1203_s30 = smov 0  }
  0x2b   : > { %s1199_s29 = scalar_lea.vmem [#allocation5], %s798_s28 }
  0x2c LB: >> { %s799_s19 = sshll.u32 %s1078_s30, 1  ;;  %s1094_s4 = smov 127   ;;  %vm186_vm0 = vcmask 1041408   ;;  %v802_v20 = vld [vmem:[%s1361_s0 + $0x4] sm:$0xf]  ;;  %vm182_vm1 = vcmask 31744   ;;  %s1078_s30 = sphi %s1203_s30, %s170_s30   ;;  %v1074_v0 = vphi %v1201_v0, %v1368_v0  }
  0x2d   : >> { %s1213_s3 = scalar_lea.vmem %s1192_s27, %s799_s19 [#allocation2]  ;;  %v175_v21 = vld [vmem:[%s1361_s0] sm:$0xf]  ;;  %v812_v24 = vld [vmem:[%s1361_s0 + $0x10] sm:$0xf]  ;;  %v816_v26 = vld [vmem:[%s1361_s0 + $0x14] sm:$0xf] }
  0x2e   : >> { %v174_v1 = vld [vmem:[%s1213_s3] sm:$0x3]  ;;  %v807_v2 = vld [vmem:[%s1213_s3 + $0x12] sm:$0x3]  ;;  %v811_v4 = vld [vmem:[%s1213_s3 + $0x24] sm:$0x3] }
  0x2f   : >> { %224 = vst [vmem:[#allocation1] ss:$4 sm:$0xff] %v174_v1  ;;  %v820_v6 = vld [vmem:[%s1213_s3 + $0x36] sm:$0x3]  ;;  %v824_v8 = vld [vmem:[%s1213_s3 + $0x2] sm:$0x3] }
  0x30   : >> { %v833_v10 = vld [vmem:[%s1213_s3 + $0x14] sm:$0x3]  ;;  %v837_v12 = vld [vmem:[%s1213_s3 + $0x26] sm:$0x3]  ;;  %v846_v14 = vld [vmem:[%s1213_s3 + $0x38] sm:$0x3] }
  0x31   : >> { %v801_v17 = vld [vmem:[%s1213_s3 + $0x12] sm:$0x3]  ;;  %v207_v19 = vsel %vm186_vm0, %v174_v1, 0  ;;  %v288_v22 = vsel %vm186_vm0, %v811_v4, 0  ;;  %v815_v23 = vld [vmem:[%s1213_s3 + $0x36] sm:$0x3] }
  0x32   : >> { %v188_v18 = vsel %vm186_vm0, %v801_v17, 0  ;;  %216 = vmatpush.bf16.msra.mxu1 %v207_v19  ;;  %v314_v25 = vsel %vm186_vm0, %v815_v23, 0  ;;  %v396_v27 = vsel %vm186_vm0, %v824_v8, 0  ;;  %v828_v28 = vld [vmem:[%s1213_s3 + $0x14] sm:$0x3]  ;;  %v504_v42 = vsel %vm186_vm0, %v837_v12, 0 }
  0x33   : >> { %197 = vmatpush.bf16.msra.mxu0 %v188_v18  ;;  %v422_v29 = vsel %vm186_vm0, %v828_v28, 0  ;;  %v805_v32 = vld [vmem:[%s1361_s0 + $0x8] sm:$0xf]  ;;  %v825_v33 = vld [vmem:[%s1361_s0 + $0x20] sm:$0xf]  ;;  %s849_s8 = sshll.u32 %s1078_s30, 3 }
  0x34   : >> { %v829_v34 = vld [vmem:[%s1361_s0 + $0x24] sm:$0xf]  ;;  %v808_v37 = vld [vmem:[%s1361_s0 + $0xc] sm:$0xf]  ;;  %v818_v43 = vld [vmem:[%s1361_s0 + $0x18] sm:$0xf]  ;;  %s603_s14 = scalar_lea.vmem %s1199_s29, %s849_s8 [#allocation5] }
  0x35   : >> { %804 = vmatmul.msk.bf16.vlgmr.msra.gmra.mxu1 %vm182_vm1, %v175_v21  ;;  %v841_v44 = vld [vmem:[%s1213_s3 + $0x38] sm:$0x3]  ;;  %v838_v45 = vld [vmem:[%s1361_s0 + $0x30] sm:$0xf]  ;;  %v842_v48 = vld [vmem:[%s1361_s0 + $0x34] sm:$0xf] }
  0x36   : >> { %v225_v3 = vld.sshfl [vmem:[#allocation1] sm:$0xff pattern:$0x73625140]  ;;  %803 = vmatmul.msk.bf16.vlgmr.msra.gmra.mxu0 %vm182_vm1, %v802_v20  ;;  %323 = vmatpush.bf16.msrb.mxu1 %v314_v25  ;;  %v530_v46 = vsel %vm186_vm0, %v841_v44, 0  ;;  %v821_v52 = vld [vmem:[%s1361_s0 + $0x1c] sm:$0xf] }
  0x37   : >> { %227 = vrot.lane.b32.xlu0 %v225_v3, %s1094_s4  ;;  %253 = vst [vmem:[#allocation1] ss:$4 sm:$0xff] %v807_v2  ;;  %297 = vmatpush.bf16.msrb.mxu0 %v288_v22  ;;  %v831_v53 = vld [vmem:[%s1361_s0 + $0x28] sm:$0xf]  ;;  %v834_v54 = vld [vmem:[%s1361_s0 + $0x2c] sm:$0xf] }
  0x38   : >> { %v844_v57 = vld [vmem:[%s1361_s0 + $0x38] sm:$0xf]  ;;  %v847_v60 = vld [vmem:[%s1361_s0 + $0x3c] sm:$0xf]  ;;  %vm604_vm2 = vcmask 64512   ;;  %s170_s30 = sadd.s32 1, %s1078_s30  }
  0x39   : >> { %p167_p6 = scmp.ge.s32.totalorder %s170_s30, 8  }
  0x3a   : >> { %431 = vmatpush.bf16.msra.mxu1 %v422_v29  ;;  %s1084_s16 = smov (%p167_p6), 0  }
  0x3b   : >> { %405 = vmatpush.bf16.msra.mxu0 %v396_v27 }
  0x3e   : >> { %v254_v5 = vld.sshfl [vmem:[#allocation1] sm:$0xff pattern:$0x73625140] }
  0x3f   : >> { %256 = vrot.lane.b32.xlu0 %v254_v5, %s1094_s4  ;;  %332 = vst [vmem:[#allocation1] ss:$4 sm:$0xff] %v811_v4 }
  0x45   : >> { %817 = vmatmul.msk.bf16.vlgmr.msrb.gmra.mxu1 %vm182_vm1, %v816_v26 }
  0x46   : >> { %v333_v7 = vld.sshfl [vmem:[#allocation1] sm:$0xff pattern:$0x73625140]  ;;  %813 = vmatmul.msk.bf16.vlgmr.msrb.gmra.mxu0 %vm182_vm1, %v812_v24  ;;  %539 = vmatpush.bf16.msrb.mxu1 %v530_v46 }
  0x47   : >> { %335 = vrot.lane.b32.xlu1 %v333_v7, %s1094_s4  ;;  %361 = vst [vmem:[#allocation1] ss:$4 sm:$0xff] %v820_v6  ;;  %513 = vmatpush.bf16.msrb.mxu0 %v504_v42 }
  0x4e   : >> { %v362_v9 = vld.sshfl [vmem:[#allocation1] sm:$0xff pattern:$0x73625140] }
  0x4f   : >> { %364 = vrot.lane.b32.xlu1 %v362_v9, %s1094_s4  ;;  %440 = vst [vmem:[#allocation1] ss:$4 sm:$0xff] %v824_v8 }
  0x55   : >> { %830 = vmatmul.msk.bf16.vlgmr.msra.gmra.mxu1 %vm182_vm1, %v829_v34 }
  0x56   : >> { %v441_v11 = vld.sshfl [vmem:[#allocation1] sm:$0xff pattern:$0x73625140]  ;;  %826 = vmatmul.msk.bf16.vlgmr.msra.gmra.mxu0 %vm182_vm1, %v825_v33 }
  0x57   : >> { %469 = vst [vmem:[#allocation1] ss:$4 sm:$0xff] %v833_v10  ;;  %443 = vrot.lane.b32.xlu2 %v441_v11, %s1094_s4 }
  0x5e   : >> { %v470_v13 = vld.sshfl [vmem:[#allocation1] sm:$0xff pattern:$0x73625140] }
  0x5f   : >> { %548 = vst [vmem:[#allocation1] ss:$4 sm:$0xff] %v837_v12  ;;  %472 = vrot.lane.b32.xlu2 %v470_v13, %s1094_s4 }
  0x65   : >> { %843 = vmatmul.msk.bf16.vlgmr.msrb.gmra.mxu1 %vm182_vm1, %v842_v48 }
  0x66   : >> { %v549_v15 = vld.sshfl [vmem:[#allocation1] sm:$0xff pattern:$0x73625140]  ;;  %839 = vmatmul.msk.bf16.vlgmr.msrb.gmra.mxu0 %vm182_vm1, %v838_v45 }
  0x67   : >> { %551 = vrot.lane.b32.xlu0 %v549_v15, %s1094_s4  ;;  %577 = vst [vmem:[#allocation1] ss:$4 sm:$0xff] %v846_v14 }
  0x6e   : >> { %v578_v16 = vld.sshfl [vmem:[#allocation1] sm:$0xff pattern:$0x73625140] }
  0x6f   : >> { %580 = vrot.lane.b32.xlu1 %v578_v16, %s1094_s4 }
  0xa9   : >> { %v228_v30 = vpop.permute.xlu0 %227 }
  0xaa   : >> { %v233_v31 = vsel %vm186_vm0, %v228_v30, 0 }
  0xab   : >> { %242 = vmatpush.bf16.msra.mxu2 %v233_v31 }
  0xae   : >> { %806 = vmatmul.msk.bf16.vlgmr.msra.gmra.mxu2 %vm182_vm1, %v805_v32 }
  0xb1   : >> { %v257_v35 = vpop.permute.xlu0 %256  ;;  %v444_v38 = vpop.permute.xlu2 %443 }
  0xb2   : >> { %v262_v36 = vsel %vm186_vm0, %v257_v35, 0  ;;  %v449_v40 = vsel %vm186_vm0, %v444_v38, 0  ;;  %v218_v62 = vpop.f32.mrf.mxu1 }
  0xb3   : >> { %271 = vmatpush.bf16.msra.mxu3 %v262_v36  ;;  %v199_v61 = vpop.f32.mrf.mxu0 }
  0xb4   : >> { %v219_v63 = vadd.f32 %v218_v62, %v199_v61 }
  0xb6   : >> { %809 = vmatmul.msk.bf16.vlgmr.msra.gmra.mxu3 %vm182_vm1, %v808_v37 }
  0xb9   : >> { %v336_v39 = vpop.permute.xlu1 %335  ;;  %v473_v47 = vpop.permute.xlu2 %472 }
  0xba   : >> { %v341_v41 = vsel %vm186_vm0, %v336_v39, 0  ;;  %v478_v50 = vsel %vm186_vm0, %v473_v47, 0  ;;  %v220_v2 = vpop.f32.mrf.mxu1 }
  0xbb   : >> { %350 = vmatpush.bf16.msrb.mxu2 %v341_v41  ;;  %v201_v1 = vpop.f32.mrf.mxu0 }
  0xbe   : >> { %819 = vmatmul.msk.bf16.vlgmr.msrb.gmra.mxu2 %vm182_vm1, %v818_v43 }
  0xbf   : >> { %458 = vmatpush.bf16.msra.mxu2 %v449_v40 }
  0xc1   : >> { %v365_v49 = vpop.permute.xlu1 %364 }
  0xc2   : >> { %v370_v51 = vsel %vm186_vm0, %v365_v49, 0  ;;  %v325_v4 = vpop.f32.mrf.mxu1  ;;  %v1080_v49 = vmov (%p167_p6), 0.0  }
  0xc3   : >> { %379 = vmatpush.bf16.msrb.mxu3 %v370_v51  ;;  %v299_v3 = vpop.f32.mrf.mxu0 }
  0xc6   : >> { %822 = vmatmul.msk.bf16.vlgmr.msrb.gmra.mxu3 %vm182_vm1, %v821_v52 }
  0xc7   : >> { %487 = vmatpush.bf16.msra.mxu3 %v478_v50 }
  0xca   : >> { %v327_v6 = vpop.f32.mrf.mxu1 }
  0xcb   : >> { %v301_v5 = vpop.f32.mrf.mxu0 }
  0xce   : >> { %832 = vmatmul.msk.bf16.vlgmr.msra.gmra.mxu2 %vm182_vm1, %v831_v53 }
  0xd2   : >> { %v433_v8 = vpop.f32.mrf.mxu1 }
  0xd3   : >> { %v407_v7 = vpop.f32.mrf.mxu0 }
  0xd6   : >> { %835 = vmatmul.msk.bf16.vlgmr.msra.gmra.mxu3 %vm182_vm1, %v834_v54 }
  0xd9   : >> { %v552_v55 = vpop.permute.xlu0 %551 }
  0xda   : >> { %v557_v56 = vsel %vm186_vm0, %v552_v55, 0  ;;  %v435_v11 = vpop.f32.mrf.mxu1 }
  0xdb   : >> { %566 = vmatpush.bf16.msrb.mxu2 %v557_v56  ;;  %v409_v10 = vpop.f32.mrf.mxu0 }
  0xde   : >> { %845 = vmatmul.msk.bf16.vlgmr.msrb.gmra.mxu2 %vm182_vm1, %v844_v57 }
  0xe1   : >> { %v581_v58 = vpop.permute.xlu1 %580 }
  0xe2   : >> { %v586_v59 = vsel %vm186_vm0, %v581_v58, 0  ;;  %v541_v15 = vpop.f32.mrf.mxu1 }
  0xe3   : >> { %595 = vmatpush.bf16.msrb.mxu3 %v586_v59  ;;  %v515_v14 = vpop.f32.mrf.mxu0 }
  0xe6   : >> { %848 = vmatmul.msk.bf16.vlgmr.msrb.gmra.mxu3 %vm182_vm1, %v847_v60 }
  0xea   : >> { %v543_v20 = vpop.f32.mrf.mxu1 }
  0xeb   : >> { %v517_v18 = vpop.f32.mrf.mxu0 }
 0x131   : >> { %v244_v9 = vpop.f32.mrf.mxu2 }
 0x132   : >> { %v248_v19 = vadd.f32 %v244_v9, %v219_v63 }
 0x139   : >> { %v246_v12 = vpop.f32.mrf.mxu2  ;;  %v273_v13 = vpop.f32.mrf.mxu3 }
 0x13a   : >> { %v277_v21 = vadd.f32 %v273_v13, %v248_v19 }
 0x13c   : >> { %v303_v24 = vadd.f32 %v299_v3, %v277_v21 }
 0x13e   : >> { %v329_v25 = vadd.f32 %v325_v4, %v303_v24 }
 0x141   : >> { %v275_v16 = vpop.f32.mrf.mxu3  ;;  %v352_v17 = vpop.f32.mrf.mxu2 }
 0x142   : >> { %v356_v26 = vadd.f32 %v352_v17, %v329_v25 }
 0x149   : >> { %v354_v22 = vpop.f32.mrf.mxu2  ;;  %v381_v23 = vpop.f32.mrf.mxu3 }
 0x14a   : >> { %v385_v29 = vadd.f32 %v381_v23, %v356_v26 }
 0x14c   : >> { %v411_v30 = vadd.f32 %v407_v7, %v385_v29 }
 0x14e   : >> { %v437_v33 = vadd.f32 %v433_v8, %v411_v30 }
 0x151   : >> { %v383_v27 = vpop.f32.mrf.mxu3  ;;  %v460_v28 = vpop.f32.mrf.mxu2 }
 0x152   : >> { %v464_v34 = vadd.f32 %v460_v28, %v437_v33 }
 0x159   : >> { %v462_v31 = vpop.f32.mrf.mxu2  ;;  %v489_v32 = vpop.f32.mrf.mxu3 }
 0x15a   : >> { %v493_v35 = vadd.f32 %v489_v32, %v464_v34 }
 0x15c   : >> { %v519_v38 = vadd.f32 %v515_v14, %v493_v35 }
 0x15e   : >> { %v545_v39 = vadd.f32 %v541_v15, %v519_v38 }
 0x161   : >> { %v491_v36 = vpop.f32.mrf.mxu3  ;;  %v568_v37 = vpop.f32.mrf.mxu2 }
 0x162   : >> { %v572_v40 = vadd.f32 %v568_v37, %v545_v39 }
 0x169   : >> { %v597_v41 = vpop.f32.mrf.mxu3  ;;  %v570_v42 = vpop.f32.mrf.mxu2 }
 0x16a   : >> { %v601_v43 = vadd.f32 %v597_v41, %v572_v40 }
 0x16c   : >> { %v606_v44 = vsel %vm604_vm2, %v601_v43, 0.0  ;;  %605 = vst.msk [vmem:[%s603_s14] sm:$0xff] %vm604_vm2, %v601_v43 }
 0x16d   : >> { %607 = vadd.xlane.f32.xlu2 %v606_v44 }
 0x171   : >> { %v599_v45 = vpop.f32.mrf.mxu3 }
 0x1df   : > { %169 = sbr.rel (!%p167_p6) target bundleno = 44 (0x2c), region = 120 }
 0x1e0   : >> { %v608_v46 = vpop.xlane.xlu2 %607 }
 0x1e1   : >> { %v609_v47 = vadd.f32 %v1074_v0, %v608_v46  }
 0x1e3   : >> { %v1368_v0 = vmov %v609_v47  ;;  %v610_v48 = vmul.f32 (%p167_p6), 0.015625, %v609_v47 }
 0x1e4 LB: >> { %s850_s17 = sshll.u32 %s1086_s16, 3  ;;  %s616_s16 = sadd.s32 1, %s1086_s16   ;;  %s1086_s16 = sphi %s1084_s16, %s616_s16   ;;  %v1082_v49 = vphi %v1080_v49, %v1081_v49  }
 0x1e5   : >> { %s619_s22 = scalar_lea.vmem %s1199_s29, %s850_s17 [#allocation5]  ;;  %p613_p13 = scmp.ge.s32.totalorder %s616_s16, 8  }
 0x1e6   : >> { %v620_v50 = vld [vmem:[%s619_s22] sm:$0xff]  ;;  %s1088_s27 = smov (%p613_p13), 0  }
 0x1e7   : >> { %v621_v0 = vsub.f32 %v620_v50, %v610_v48 }
 0x1e9   : >> { %v622_v51 = vmul.f32 %v621_v0, %v621_v0 }
 0x1eb   : >> { %v624_v52 = vsel %vm604_vm2, %v622_v51, 0.0 }
 0x1ec   : >> { %625 = vadd.xlane.f32.xlu0 %v624_v52 }
 0x25e   : > { %615 = sbr.rel (!%p613_p13) target bundleno = 484 (0x1e4), region = 131 }
 0x25f   : >> { %v626_v53 = vpop.xlane.xlu0 %625 }
 0x260   : >> { %v627_v54 = vadd.f32 %v1082_v49, %v626_v53  }
 0x262   : >> { %v1081_v49 = vmov %v627_v54   ;;  %v628_v55 = vmul.f32 (%p613_p13), 0.015625, %v627_v54 }
 0x264   : > { %v629_v56 = vadd.f32 1e-05, %v628_v55 }
 0x266   : > { %952 = vrsqrt.f32 %v629_v56  ;;  %vm636_vm3 = vweird.f32 %v629_v56 }
 0x26c   : > { %v953_v57 = vpop.eup %952 }
 0x26d   : > { %v631_v58 = vmul.f32 %v953_v57, %v629_v56  ;;  %vm637_vm4 = vweird.f32 %v953_v57 }
 0x26e   : > { %vm1319_vm5 = vmor %vm636_vm3, %vm637_vm4 }
 0x26f   : > { %v632_v59 = vmul.f32 %v953_v57, %v631_v58 }
 0x271   : > { %v633_v60 = vmul.f32 0.5, %v632_v59 }
 0x273   : > { %v634_v61 = vsub.f32 1.5, %v633_v60 }
 0x275   : > { %v635_v63 = vmul.f32 %v953_v57, %v634_v61 }
 0x277   : > { %v639_v1 = vsel %vm1319_vm5, %v953_v57, %v635_v63 }
 0x278 LB: >> { %s851_s30 = sshll.u32 %s1090_s27, 3  ;;  %s645_s27 = sadd.s32 1, %s1090_s27   ;;  %s1090_s27 = sphi %s1088_s27, %s645_s27  }
 0x279   : >> { %s647_s3 = scalar_lea.vmem %s1199_s29, %s851_s30 [#allocation5]  ;;  %p642_p2 = scmp.ge.s32.totalorder %s645_s27, 8  }
 0x27a   : >> { %v648_v2 = vld [vmem:[%s647_s3] sm:$0xff]  ;;  %s857_s23 = sshll.u32 (%p642_p2), %s1133_s13, 6  ;;  %s667_s19 = sshll.u32 (%p642_p2), %s1199_s29, 4  ;;  %s668_s19 = int_to_ptr.vmem [resolvable:$true] %s667_s19 }
 0x27b   : >> { %v649_v3 = vsub.f32 %v648_v2, %v610_v48  ;;  %s666_s28 = scalar_lea.hbm (%p642_p2), %s1363_s2, %s857_s23  ;;  %s655_s5 = scalar_lea.sflag (%p642_p2), [#allocation4], %s1188_s24 }
 0x27c   : > { %s669_s4 = sshll.u32 (%p642_p2), %s666_s28, 4  ;;  %s1004_s13 = scalar_lea.hbm (%p642_p2), %s1363_s2, 128  ;;  %s670_s4 = int_to_ptr.hbm [resolvable:$true] %s669_s4 }
 0x27d   : >> { %v650_v4 = vmul.f32 %v649_v3, %v639_v1  ;;  %644 = sbr.rel (!%p642_p2) target bundleno = 632 (0x278), region = 142  ;;  %s998_s6 = sshra.s32 (%p642_p2), %s670_s4, 4  ;;  %s999_s6 = int_to_ptr.hbm [resolvable:$true] %s998_s6 }
 0x27e   : > { %s1000_s7 = scalar_lea.hbm (%p642_p2), %s999_s6, 64  ;;  %p1005_p7 = scmp.lt.s32.totalorder (%p642_p2), %s999_s6, %s1363_s2 }
 0x27f   : >> { %v651_v5 = vmax.f32 %v650_v4, 0.0  ;;  %p1001_p3 = scmp.ne.s32.totalorder (%p642_p2), %s999_s6, %s1000_s7  ;;  %p1006_p8 = scmp.lt.s32.totalorder (%p642_p2), %s1004_s13, %s1000_s7 }
 0x281   : >> { %653 = vst.msk [vmem:[%s647_s3] sm:$0xff] %vm604_vm2, %v651_v5  ;;  %p1002_p4 = pnand (%p642_p2), %p1001_p3, %p1158_p11  ;;  %p1007_p10 = por (%p642_p2), %p1006_p8, %p1005_p7 }
 0x283   : > { %p1003_p5 = pneg %p1002_p4 }
 0x285   : > { %p1008_p0 = pnand %p1007_p10, %p1003_p5 }
 0x287   : > { %1011 = shalt.err (!%p1008_p0)
}
 0x288   : > { %s1095_s24 = smov 128   ;;  %s1096_s29 = smov 8  }
 0x289   : > { %863 = dma.vmem_to_hbm [thread:$0]  (%p1158_p11), %s668_s19, 1024, %s670_s4, %s655_s5, %s1095_s24, %s1095_s24, %s1096_s29  }
 0x28a PF: > { %s684_s22 = sand.u32 1, %s1058_s9   ;;  %p870_p1 = pnand %p795_p9, %p1162_p12 }
 0x28b   : > { %s685_s27 = scalar_lea.sflag [#allocation4], %s684_s22 }
 0x28c   : > { %p871_p6 = pneg %p870_p1 }
 0x28e   : > { %1053 = dma.done.wait (%p871_p6), %s685_s27, 1024  }
 0x28f   : > { %1055 = vsyncadd (%p871_p6), %s685_s27, 4294966272  ;;  %p15_p13 = scmp.ge.s32.totalorder %s1137_s15, 4   ;;  %s1371_s9 = smov %s1062_s10 }
 0x290   : > { %s1372_s10 = smov %s1066_s11  ;;  %s1373_s11 = smov %s1149_s18 }
 0x291   : > { %s1374_s12 = smov %s1137_s15  ;;  %17 = sbr.rel (!%p15_p13) target bundleno = 5 (0x5), region = 153 }
 0x296   :  { %691 = vsyncpa [#allocation3], 1 }
 0x297   :  { %693 = vsyncpa [#allocation3 + $0x1], 1 }
 0x298   :  { %694 = vsyncpa [#allocation4], 1 }
 0x299   :  { %696 = vsyncpa [#allocation4 + $0x1], 1 }

</bundles_post_ra>
